<compile_context>
chip_gen: v7x
topology: tpu7x:2x2x1
jax: 0.10.0
libtpu: 0.0.40
codegen_flags: <defaults>
</compile_context>

<pallas_src>
import functools

import jax
import jax.numpy as jnp
from jax.experimental import pallas as pl
from jax.experimental.pallas import tpu as pltpu


def _round_up(x, m):
    return ((x + m - 1) // m) * m


def _focal_loss_tile_kernel(x_ref, t_ref, aw_ref, out_ref, *, gamma):
    x = x_ref[...].astype(jnp.float32)      # (TILE_N, C) logits
    t = t_ref[...]                          # (TILE_N, 1) int32 targets
    aw = aw_ref[...]                        # (TILE_N, 1) f32 = alpha[target]*weight (0 on pad rows)

    tn, c = x.shape

    # Row-wise log-sum-exp (numerically stable; no explicit softmax divide).
    m = jnp.max(x, axis=-1, keepdims=True)                               # (TILE_N, 1)
    xm = x - m                                                           # (TILE_N, C)
    lse = jnp.log(jnp.sum(jnp.exp(xm), axis=-1, keepdims=True))          # (TILE_N, 1)

    # One-hot gather of the target logit (== torch scatter_ + (P*mask).sum).
    # NOTE: out-of-range targets silently give (x[target]-m)=0; PyTorch would raise.
    col = jax.lax.broadcasted_iota(jnp.int32, (tn, c), 1)
    mask = (col == t).astype(jnp.float32)
    x_t_m = jnp.sum(xm * mask, axis=-1, keepdims=True)                   # x[target] - m

    log_p = x_t_m - lse                                                  # log softmax(x)[target]
    probs = jnp.exp(log_p)
    om = 1.0 - probs

    g = float(gamma)
    if g == 2.0:
        focal = om * om
    elif g == float(int(g)) and g >= 0.0:
        focal = jnp.ones_like(om)
        for _ in range(int(g)):
            focal = focal * om
    else:
        focal = jnp.power(om, jnp.float32(g))

    batch_loss = -aw * focal * log_p                                     # (TILE_N, 1)

    # Per-tile partial sum, broadcast to one full f32 vreg -> unmasked lane-dense store.
    partial = jnp.sum(batch_loss)
    out_ref[...] = jnp.broadcast_to(partial, out_ref.shape)


def focal_loss(inputs, targets, *, class_num, alpha=None, gamma=2.0,
               size_average=True, global_weight=None, tile_n=None):
    """JAX/Pallas equivalent of FocalLoss.forward (sigmoid=False, reduce=True)."""
    n, c = inputs.shape
    assert c == class_num

    if alpha is None:
        alpha_vec = jnp.ones((class_num,), jnp.float32)        # torch.ones(class_num, 1)
    else:
        alpha_vec = jnp.asarray(alpha, jnp.float32).reshape(-1)

    t = jnp.asarray(targets, jnp.int32).reshape(-1)

    # Pre-fold alpha[target] (and, matching the PyTorch module, global_weight only on
    # the size_average path) into a single (N, 1) stream.
    aw = jnp.take(alpha_vec, t, axis=0)
    if size_average and global_weight is not None:
        aw = aw * jnp.asarray(global_weight, jnp.float32).reshape(-1)

    # Row tile: multiple of 8 sublanes, capped so a double-buffered f32 logits tile
    # stays around 12 MiB.
    if tile_n is None:
        rows_budget = max(8, (6 * 1024 * 1024) // max(1, c * 4))
        tile_n = min(1024, rows_budget, _round_up(n, 8))
    tile_n = max(8, (int(tile_n) // 8) * 8)

    num_tiles = int(pl.cdiv(n, tile_n))
    n_pad = num_tiles * tile_n
    if n_pad != n:
        pad = n_pad - n
        inputs = jnp.pad(inputs, ((0, pad), (0, 0)))   # zero logits -> finite log_p on pad rows
        t = jnp.pad(t, (0, pad))                       # target 0 (valid class) on pad rows
        aw = jnp.pad(aw, (0, pad))                     # weight 0 -> pad rows contribute 0 loss

    t2d = t.reshape(n_pad, 1)
    aw2d = aw.astype(jnp.float32).reshape(n_pad, 1)

    kernel = functools.partial(_focal_loss_tile_kernel, gamma=float(gamma))

    partials = pl.pallas_call(
        kernel,
        out_shape=jax.ShapeDtypeStruct((num_tiles, 8, 128), jnp.float32),
        grid=(num_tiles,),
        in_specs=[
            pl.BlockSpec((tile_n, c), lambda i: (i, 0)),   # logits tile
            pl.BlockSpec((tile_n, 1), lambda i: (i, 0)),   # targets tile
            pl.BlockSpec((tile_n, 1), lambda i: (i, 0)),   # alpha*weight tile
        ],
        out_specs=pl.BlockSpec((1, 8, 128), lambda i: (i, 0, 0)),
        compiler_params=pltpu.CompilerParams(
            dimension_semantics=("parallel",),             # shards across both TCs on v7x
            vmem_limit_bytes=48 * 1024 * 1024,
        ),
    )(inputs, t2d, aw2d)

    total = jnp.sum(partials[:, 0, 0])
    if size_average:
        # Plain mean of (weighted) per-sample losses, as in the PyTorch module.
        total = total / jnp.float32(n)
    return total


def _focal_loss_ref(inputs, targets, *, alpha=None, gamma=2.0,
                    size_average=True, global_weight=None):
    # Pure-JAX reference mirroring the PyTorch softmax branch.
    x = inputs.astype(jnp.float32)
    log_p_all = jax.nn.log_softmax(x, axis=-1)
    t = jnp.asarray(targets, jnp.int32).reshape(-1, 1)
    log_p = jnp.take_along_axis(log_p_all, t, axis=1)
    probs = jnp.exp(log_p)
    if alpha is None:
        a = jnp.ones_like(log_p)
    else:
        a = jnp.asarray(alpha, jnp.float32).reshape(-1)[t.reshape(-1)].reshape(-1, 1)
    batch_loss = -a * jnp.power(1.0 - probs, gamma) * log_p
    if size_average:
        if global_weight is not None:
            batch_loss = batch_loss * jnp.asarray(global_weight, jnp.float32).reshape(-1, 1)
        return jnp.mean(batch_loss)
    return jnp.sum(batch_loss)


if __name__ == "__main__":
    key = jax.random.PRNGKey(0)
    k1, k2, k3, k4, k5 = jax.random.split(key, 5)

    # Case 1: single tile, defaults (alpha=None, no weight), N=8, C=16.
    N1, C1 = 8, 16
    logits1 = jax.random.normal(k1, (N1, C1), dtype=jnp.float32)
    targets1 = jax.random.randint(k2, (N1,), 0, C1, dtype=jnp.int32)
    loss1 = jax.block_until_ready(focal_loss(logits1, targets1, class_num=C1, gamma=2.0))
    ref1 = _focal_loss_ref(logits1, targets1, gamma=2.0)
    assert jnp.allclose(loss1, ref1, rtol=1e-5, atol=1e-6), (loss1, ref1)

    # Case 2: multi-tile grid (tile_n=8 -> 3 tiles) with row padding (N=20),
    #         per-class alpha and a global weight, exercising the "parallel" grid axis.
    N2, C2 = 20, 16
    logits2 = 3.0 * jax.random.normal(k3, (N2, C2), dtype=jnp.float32)
    targets2 = jax.random.randint(k4, (N2,), 0, C2, dtype=jnp.int32)
    alpha2 = jax.random.uniform(k5, (C2,), dtype=jnp.float32) + 0.5
    weight2 = jnp.linspace(0.5, 1.5, N2, dtype=jnp.float32)
    loss2 = jax.block_until_ready(
        focal_loss(logits2, targets2, class_num=C2, alpha=alpha2, gamma=2.0,
                   global_weight=weight2, tile_n=8))
    ref2 = _focal_loss_ref(logits2, targets2, alpha=alpha2, gamma=2.0,
                           global_weight=weight2)
    assert jnp.allclose(loss2, ref2, rtol=1e-5, atol=1e-6), (loss2, ref2)

    # Case 3: size_average=False (sum; global_weight ignored, as in the PyTorch module).
    loss3 = jax.block_until_ready(
        focal_loss(logits2, targets2, class_num=C2, alpha=alpha2, gamma=2.0,
                   size_average=False, global_weight=weight2, tile_n=8))
    ref3 = _focal_loss_ref(logits2, targets2, alpha=alpha2, gamma=2.0,
                           size_average=False)
    assert jnp.allclose(loss3, ref3, rtol=1e-5, atol=1e-5), (loss3, ref3)

    print("KERNEL_OK")
</pallas_src>

<mosaic_0001>
module attributes {stable_mosaic.version = 11 : i64} {
  func.func @_focal_loss_tile_kernel(%arg0: i32, %arg1: memref<8x16xf32, #tpu.memory_space<vmem>>, %arg2: memref<8x1xi32, #tpu.memory_space<vmem>>, %arg3: memref<8x1xf32, #tpu.memory_space<vmem>>, %arg4: memref<1x8x128xf32, #tpu.memory_space<vmem>>) attributes {dimension_semantics = [#tpu.dimension_semantics<parallel>], iteration_bounds = array<i64: 1>, scalar_prefetch = 0 : i64, scratch_operands = 0 : i64, tpu.core_type = #tpu.core_type<tc>, window_params = [{transform_indices = @transform_0, window_bounds = array<i64: 8, 16>}, {transform_indices = @transform_1, window_bounds = array<i64: 8, 1>}, {transform_indices = @transform_2, window_bounds = array<i64: 8, 1>}, {transform_indices = @transform_3, window_bounds = array<i64: 1, 8, 128>}]} {
    %c0 = arith.constant 0 : index
    %c0_0 = arith.constant 0 : index
    %0 = vector.load %arg1[%c0, %c0_0] : memref<8x16xf32, #tpu.memory_space<vmem>>, vector<8x16xf32>
    %c0_1 = arith.constant 0 : index
    %c0_2 = arith.constant 0 : index
    %1 = vector.load %arg2[%c0_1, %c0_2] : memref<8x1xi32, #tpu.memory_space<vmem>>, vector<8x1xi32>
    %c0_3 = arith.constant 0 : index
    %c0_4 = arith.constant 0 : index
    %2 = vector.load %arg3[%c0_3, %c0_4] : memref<8x1xf32, #tpu.memory_space<vmem>>, vector<8x1xf32>
    %cst = arith.constant dense<0xFF800000> : vector<8xf32>
    %3 = vector.multi_reduction <maximumf>, %0, %cst [1] : vector<8x16xf32> to vector<8xf32>
    %4 = vector.shape_cast %3 : vector<8xf32> to vector<8x1xf32>
    %5 = vector.broadcast %4 : vector<8x1xf32> to vector<8x16xf32>
    %6 = arith.subf %0, %5 : vector<8x16xf32>
    %7 = math.exp %6 : vector<8x16xf32>
    %cst_5 = arith.constant dense<0.000000e+00> : vector<8xf32>
    %8 = vector.multi_reduction <add>, %7, %cst_5 [1] : vector<8x16xf32> to vector<8xf32>
    %9 = vector.shape_cast %8 : vector<8xf32> to vector<8x1xf32>
    %10 = math.log %9 : vector<8x1xf32>
    %11 = tpu.iota {dimensions = array<i32: 1>} : vector<8x16xi32>
    %12 = vector.broadcast %1 : vector<8x1xi32> to vector<8x16xi32>
    %13 = arith.cmpi eq, %11, %12 : vector<8x16xi32>
    %14 = arith.extui %13 : vector<8x16xi1> to vector<8x16xi32>
    %15 = arith.sitofp %14 : vector<8x16xi32> to vector<8x16xf32>
    %16 = arith.mulf %6, %15 : vector<8x16xf32>
    %cst_6 = arith.constant dense<0.000000e+00> : vector<8xf32>
    %17 = vector.multi_reduction <add>, %16, %cst_6 [1] : vector<8x16xf32> to vector<8xf32>
    %18 = vector.shape_cast %17 : vector<8xf32> to vector<8x1xf32>
    %19 = arith.subf %18, %10 : vector<8x1xf32>
    %20 = math.exp %19 : vector<8x1xf32>
    %cst_7 = arith.constant 1.000000e+00 : f32
    %21 = vector.broadcast %cst_7 : f32 to vector<8x1xf32>
    %22 = arith.subf %21, %20 : vector<8x1xf32>
    %23 = arith.mulf %22, %22 : vector<8x1xf32>
    %cst_8 = arith.constant 0.000000e+00 : f32
    %24 = vector.broadcast %cst_8 : f32 to vector<8x1xf32>
    %25 = arith.subf %24, %2 : vector<8x1xf32>
    %26 = arith.mulf %25, %23 : vector<8x1xf32>
    %27 = arith.mulf %26, %19 : vector<8x1xf32>
    %28 = vector.shape_cast %27 : vector<8x1xf32> to vector<1x8x1xf32>
    %cst_9 = arith.constant dense<0.000000e+00> : vector<1xf32>
    %29 = vector.multi_reduction <add>, %28, %cst_9 [1, 2] : vector<1x8x1xf32> to vector<1xf32>
    %30 = vector.shape_cast %29 : vector<1xf32> to vector<1x1x1xf32>
    %31 = vector.extract %30[0, 0, 0] : f32 from vector<1x1x1xf32>
    %32 = vector.broadcast %31 : f32 to vector<1x8x128xf32>
    %c0_10 = arith.constant 0 : index
    %c0_11 = arith.constant 0 : index
    %c0_12 = arith.constant 0 : index
    %33 = vector.load %arg4[%c0_10, %c0_11, %c0_12] : memref<1x8x128xf32, #tpu.memory_space<vmem>>, vector<1x8x128xf32>
    tpu.vector_store %arg4[%c0_10, %c0_11, %c0_12], %32 {strides = array<i32>} : memref<1x8x128xf32, #tpu.memory_space<vmem>>, vector<1x8x128xf32>,
    return
  }
  func.func @transform_0(%arg0: i32) -> (i32, i32) {
    %c0_i32 = arith.constant 0 : i32
    %c0_i32_0 = arith.constant 0 : i32
    return %arg0, %c0_i32 : i32, i32
  }
  func.func @transform_1(%arg0: i32) -> (i32, i32) {
    %c0_i32 = arith.constant 0 : i32
    %c0_i32_0 = arith.constant 0 : i32
    return %arg0, %c0_i32 : i32, i32
  }
  func.func @transform_2(%arg0: i32) -> (i32, i32) {
    %c0_i32 = arith.constant 0 : i32
    %c0_i32_0 = arith.constant 0 : i32
    return %arg0, %c0_i32 : i32, i32
  }
  func.func @transform_3(%arg0: i32) -> (i32, i32, i32) {
    %c0_i32 = arith.constant 0 : i32
    %c0_i32_0 = arith.constant 0 : i32
    %c0_i32_1 = arith.constant 0 : i32
    return %arg0, %c0_i32, %c0_i32_0 : i32, i32, i32
  }
}

</mosaic_0001>

<bundles_post_ra>
// kernel: tpu_custom_call.1
= control target key start
LH: loop header
LB: loop body
LE: loop exit
PB: predicated region body
PF: predicated region fallthrough
CT: control target
= control target key end

     0   :  { %vm18_vm0 = vcmask 130048   ;;  %s161_s0 = inlined_call_operand.vmem [shape: f32[8,16], index: 0, kind: input, shape index: {}]   ;;  %s162_s1 = inlined_call_operand.vmem [shape: s32[8,1], index: 1, kind: input, shape index: {}]   ;;  %s163_s2 = inlined_call_operand.vmem [shape: f32[8,1], index: 2, kind: input, shape index: {}]   ;;  %s164_s3 = inlined_call_operand.hbm [shape: f32[1,8,128], index: 3, kind: output, shape index: {}]  }
   0x1   :  { %v15_v0 = vld [vmem:[%s161_s0] sm:$0xff] }
   0x2   :  { %8 = vsyncpa [#allocation3], 0  ;;  %v19_v1 = vsel %vm18_vm0, %v15_v0, -inf  ;;  %v114_v2 = vmov 0   ;;  %v16_v3 = vld [vmem:[%s162_s1] sm:$0xff]  ;;  %v30_v6 = vlaneseq  ;;  %v115_v10 = vmov 0.0  }
   0x3   :  { %83 = vset.pattern.permute.xlu0 %v114_v2  ;;  %v17_v22 = vld [vmem:[%s163_s2] sm:$0xff]  ;;  %vm50_vm2 = vcmask 7168   ;;  %s116_s16 = smov [#allocation2]  }
   0x4   :  { %20 = vmax.xlane.f32.xlu0 %v19_v1  ;;  %v31_v8 = vand.u32 127, %v30_v6  ;;  %v47_v25 = vsub.f32 0.0, %v17_v22  ;;  %s69_s17 = sshll.u32 %s116_s16, 4  ;;  %s70_s17 = int_to_ptr.vmem [resolvable:$true] %s69_s17 }
   0x5   :  { %s90_s18 = scalar_lea.vmem %s70_s17, 128  ;;  %p95_p1 = scmp.lt.s32.totalorder %s70_s17, %s70_s17 }
   0x6   :  { %p91_p0 = scmp.ne.s32.totalorder %s70_s17, %s90_s18  ;;  %p96_p2 = scmp.lt.s32.totalorder %s90_s18, %s90_s18 }
   0x8   :  { %p97_p3 = por %p96_p2, %p95_p1 }
   0xa   :  { %p98_p4 = pnand %p97_p3, %p91_p0 }
  0x1a   :  { %33 = vperm.xlu0 %83, %v16_v3  }
  0x91   :  { %v21_v4 = vpop.xlane.xlu0 %20 }
  0x92   :  { %v22_v5 = vsub.f32 %v15_v0, %v21_v4 }
  0x94   :  { %v23_v7 = vmul.f32 1.442695, %v22_v5 }
  0x96   :  { %84 = vpow2.f32 %v23_v7 }
  0x99   :  { %v34_v9 = vpop.permute.xlu0 %33 }
  0x9a   :  { %vm35_vm1 = vcmp.eq.s32.totalorder %v31_v8, %v34_v9 }
  0x9b   :  { %v77_v11 = vsel %vm35_vm1, 1.0, %v115_v10 }
  0x9c   :  { %v38_v14 = vmul.f32 %v77_v11, %v22_v5 }
  0x9e   :  { %v39_v15 = vsel %vm18_vm0, %v38_v14, 0.0 }
  0xa0   :  { %v85_v12 = vpop.eup %84 }
  0xa1   :  { %v25_v13 = vsel %vm18_vm0, %v85_v12, 0.0 }
  0xa2   :  { %26 = vadd.xlane.f32.xlu1 %v25_v13 }
  0xa6   :  { %40 = vadd.xlane.f32.xlu1 %v39_v15 }
 0x12f   :  { %v27_v16 = vpop.xlane.xlu1 %26 }
 0x130   :  { %86 = vlog2.f32 %v27_v16 }
 0x133   :  { %v41_v19 = vpop.xlane.xlu1 %40 }
 0x13a   :  { %v87_v17 = vpop.eup %86 }
 0x13b   :  { %v29_v18 = vmul.f32 0.6931472, %v87_v17 }
 0x13d   :  { %v42_v20 = vsub.f32 %v41_v19, %v29_v18 }
 0x13f   :  { %v43_v21 = vmul.f32 1.442695, %v42_v20 }
 0x141   :  { %88 = vpow2.f32 %v43_v21 }
 0x14b   :  { %v89_v23 = vpop.eup %88 }
 0x14c   :  { %v45_v24 = vsub.f32 1.0, %v89_v23 }
 0x14e   :  { %v46_v26 = vmul.f32 %v45_v24, %v45_v24 }
 0x150   :  { %v48_v27 = vmul.f32 %v47_v25, %v46_v26 }
 0x152   :  { %v49_v28 = vmul.f32 %v48_v27, %v42_v20 }
 0x154   :  { %v51_v29 = vsel %vm50_vm2, %v49_v28, 0.0 }
 0x155   :  { %52 = vadd.xlane.f32.xlu1 %v51_v29 }
 0x1e2   :  { %v53_v30 = vpop.xlane.xlu1 %52 }
 0x1e3   :  { %v54_v31 = vrot.slane %v53_v30, 4 }
 0x1e5   :  { %v55_v32 = vadd.f32 %v54_v31, %v53_v30 }
 0x1e7   :  { %v56_v33 = vrot.slane %v55_v32, 2 }
 0x1e9   :  { %v57_v34 = vadd.f32 %v56_v33, %v55_v32 }
 0x1eb   :  { %v58_v35 = vrot.slane %v57_v34, 1 }
 0x1ed   :  { %v59_v36 = vadd.f32 %v58_v35, %v57_v34 }
 0x1ef   :  { %78 = vpush %v59_v36 }
 0x220   :  { %s79_s2 = spop %78 }
 0x221   :  { %v61_v37 = vstv %s79_s2 }
 0x222   :  { %62 = vst [vmem:[#allocation2] sm:$0xff] %v61_v37 }
 0x223   :  { %101 = shalt.err (!%p98_p4)
}
 0x224   :  { %s102_s21 = scalar_lea.hbm %s164_s3, 128 }
 0x225   :  { %p103_p5 = scmp.ne.s32.totalorder %s164_s3, %s102_s21  ;;  %p106_p6 = scmp.lt.u32.totalorder %s102_s21, %s164_s3 }
 0x227   :  { %p108_p7 = pnand %p106_p6, %p103_p5 }
 0x229   :  { %111 = shalt.err (!%p108_p7)
}
 0x22a   :  { %72 = dma.vmem_to_hbm [thread:$0]  %s70_s17, 128, %s164_s3, [#allocation3]  }
 0x22b   :  { %112 = dma.done.wait [#allocation3], 128  }
 0x22c   :  { %113 = vsyncadd [#allocation3], 4294967168 }
 0x22d   :  { %76 = vsyncpa [#allocation3], 1 }

</bundles_post_ra>
